<compile_context>
chip_gen: v7x
topology: tpu7x:2x2x1
jax: 0.10.0
libtpu: 0.0.40
codegen_flags: <defaults>
</compile_context>

<pallas_src>
import jax
import jax.numpy as jnp
from jax.experimental import pallas as pl
from jax.experimental.pallas import tpu as pltpu  # noqa: F401  (TPU backend)

# Shape from the original module: x231 is (H, W, C) = (49, 49, 12) float32.
H, W, C = 49, 49, 12


def _cost(dtype):
    nbytes = H * W * C * jnp.dtype(dtype).itemsize
    return pl.CostEstimate(flops=0, transcendentals=0, bytes_accessed=2 * nbytes)


def _permute_kernel_strided(x_ref, o_ref):
    # x_ref: (H, W*C) row-major view of (H, W, C);  o_ref: (C, H, W).
    # out[c, h, w] = x[h, w*C + c]: one lane-strided (stride=C) read per
    # channel; C=12 static iterations, each yielding a full (49, 49) slab.
    for c in range(C):
        o_ref[c, :, :] = x_ref[:, pl.ds(c, W, stride=C)]


def _permute_kernel_transpose2d(x_ref, o_ref):
    # Proven baseline: x_ref (H*W, C) -> o_ref (C, H*W) via one 2D transpose.
    o_ref[...] = x_ref[...].T


@jax.jit
def _permute_201_strided(x):
    x2d = x.reshape(H, W * C)  # free row-major reshape under jit
    return pl.pallas_call(
        _permute_kernel_strided,
        out_shape=jax.ShapeDtypeStruct((C, H, W), x.dtype),
        # Gridless, full-extent blocks: the whole ~115 KB tensor fits VMEM,
        # so there is no pipelining, grid, or core-splitting to tune.
        in_specs=[pl.BlockSpec((H, W * C), lambda: (0, 0))],
        out_specs=pl.BlockSpec((C, H, W), lambda: (0, 0, 0)),
        cost_estimate=_cost(x.dtype),
    )(x2d)


@jax.jit
def _permute_201_transpose2d(x):
    x2d = x.reshape(H * W, C)
    out2d = pl.pallas_call(
        _permute_kernel_transpose2d,
        out_shape=jax.ShapeDtypeStruct((C, H * W), x.dtype),
        in_specs=[pl.BlockSpec((H * W, C), lambda: (0, 0))],
        out_specs=pl.BlockSpec((C, H * W), lambda: (0, 0)),
        cost_estimate=_cost(x.dtype),
    )(x2d)
    return out2d.reshape(C, H, W)


_IMPL = None  # chosen once, on first call


def permute_201(x):
    """Equivalent of torch .permute(2, 0, 1) on an (H, W, C) = (49, 49, 12) array."""
    global _IMPL
    if _IMPL is None:
        # Prefer the lane-dense strided kernel; verify it compiles and is
        # bit-exact on a probe input, otherwise use the proven baseline.
        probe = jnp.arange(H * W * C, dtype=jnp.float32).reshape(H, W, C)
        want = jnp.transpose(probe, (2, 0, 1))
        try:
            got = jax.block_until_ready(_permute_201_strided(probe))
            ok = bool(jnp.array_equal(got, want))
            _IMPL = _permute_201_strided if ok else _permute_201_transpose2d
        except Exception:  # noqa: BLE001 -- lane-strided ref read not lowerable here
            _IMPL = _permute_201_transpose2d
    return _IMPL(x)


if __name__ == "__main__":
    key = jax.random.PRNGKey(0)
    x231 = jax.random.normal(key, (H, W, C), dtype=jnp.float32)

    out = permute_201(x231)
    out = jax.block_until_ready(out)

    # Reference: same semantics as torch.permute(2, 0, 1).
    ref = jnp.transpose(x231, (2, 0, 1))
    assert out.shape == (C, H, W), out.shape
    assert out.dtype == x231.dtype
    assert jnp.array_equal(out, ref), "mismatch vs reference permute"

    print("KERNEL_OK")
</pallas_src>

<mosaic_0001>
module attributes {stable_mosaic.version = 11 : i64} {
  func.func @_permute_kernel_strided(%arg0: memref<49x588xf32, #tpu.memory_space<vmem>>, %arg1: memref<12x49x49xf32, #tpu.memory_space<vmem>>) attributes {dimension_semantics = [], scalar_prefetch = 0 : i64, scratch_operands = 0 : i64, tpu.core_type = #tpu.core_type<tc>} {
    %c0 = arith.constant 0 : index
    %c0_0 = arith.constant 0 : index
    %0 = tpu.strided_load %arg0[%c0, %c0_0] {strides = array<i32: 1, 12>} : memref<49x588xf32, #tpu.memory_space<vmem>>, vector<49x49xf32>
    %c0_1 = arith.constant 0 : index
    %c0_2 = arith.constant 0 : index
    %c0_3 = arith.constant 0 : index
    %1 = vector.load %arg1[%c0_1, %c0_2, %c0_3] : memref<12x49x49xf32, #tpu.memory_space<vmem>>, vector<1x49x49xf32>
    %2 = vector.shape_cast %1 : vector<1x49x49xf32> to vector<49x49xf32>
    %3 = vector.shape_cast %0 : vector<49x49xf32> to vector<1x49x49xf32>
    tpu.vector_store %arg1[%c0_1, %c0_2, %c0_3], %3 {strides = array<i32>} : memref<12x49x49xf32, #tpu.memory_space<vmem>>, vector<1x49x49xf32>,
    %c0_4 = arith.constant 0 : index
    %c1 = arith.constant 1 : index
    %4 = tpu.strided_load %arg0[%c0_4, %c1] {strides = array<i32: 1, 12>} : memref<49x588xf32, #tpu.memory_space<vmem>>, vector<49x49xf32>
    %c1_5 = arith.constant 1 : index
    %c0_6 = arith.constant 0 : index
    %c0_7 = arith.constant 0 : index
    %5 = vector.load %arg1[%c1_5, %c0_6, %c0_7] : memref<12x49x49xf32, #tpu.memory_space<vmem>>, vector<1x49x49xf32>
    %6 = vector.shape_cast %5 : vector<1x49x49xf32> to vector<49x49xf32>
    %7 = vector.shape_cast %4 : vector<49x49xf32> to vector<1x49x49xf32>
    tpu.vector_store %arg1[%c1_5, %c0_6, %c0_7], %7 {strides = array<i32>} : memref<12x49x49xf32, #tpu.memory_space<vmem>>, vector<1x49x49xf32>,
    %c0_8 = arith.constant 0 : index
    %c2 = arith.constant 2 : index
    %8 = tpu.strided_load %arg0[%c0_8, %c2] {strides = array<i32: 1, 12>} : memref<49x588xf32, #tpu.memory_space<vmem>>, vector<49x49xf32>
    %c2_9 = arith.constant 2 : index
    %c0_10 = arith.constant 0 : index
    %c0_11 = arith.constant 0 : index
    %9 = vector.load %arg1[%c2_9, %c0_10, %c0_11] : memref<12x49x49xf32, #tpu.memory_space<vmem>>, vector<1x49x49xf32>
    %10 = vector.shape_cast %9 : vector<1x49x49xf32> to vector<49x49xf32>
    %11 = vector.shape_cast %8 : vector<49x49xf32> to vector<1x49x49xf32>
    tpu.vector_store %arg1[%c2_9, %c0_10, %c0_11], %11 {strides = array<i32>} : memref<12x49x49xf32, #tpu.memory_space<vmem>>, vector<1x49x49xf32>,
    %c0_12 = arith.constant 0 : index
    %c3 = arith.constant 3 : index
    %12 = tpu.strided_load %arg0[%c0_12, %c3] {strides = array<i32: 1, 12>} : memref<49x588xf32, #tpu.memory_space<vmem>>, vector<49x49xf32>
    %c3_13 = arith.constant 3 : index
    %c0_14 = arith.constant 0 : index
    %c0_15 = arith.constant 0 : index
    %13 = vector.load %arg1[%c3_13, %c0_14, %c0_15] : memref<12x49x49xf32, #tpu.memory_space<vmem>>, vector<1x49x49xf32>
    %14 = vector.shape_cast %13 : vector<1x49x49xf32> to vector<49x49xf32>
    %15 = vector.shape_cast %12 : vector<49x49xf32> to vector<1x49x49xf32>
    tpu.vector_store %arg1[%c3_13, %c0_14, %c0_15], %15 {strides = array<i32>} : memref<12x49x49xf32, #tpu.memory_space<vmem>>, vector<1x49x49xf32>,
    %c0_16 = arith.constant 0 : index
    %c4 = arith.constant 4 : index
    %16 = tpu.strided_load %arg0[%c0_16, %c4] {strides = array<i32: 1, 12>} : memref<49x588xf32, #tpu.memory_space<vmem>>, vector<49x49xf32>
    %c4_17 = arith.constant 4 : index
    %c0_18 = arith.constant 0 : index
    %c0_19 = arith.constant 0 : index
    %17 = vector.load %arg1[%c4_17, %c0_18, %c0_19] : memref<12x49x49xf32, #tpu.memory_space<vmem>>, vector<1x49x49xf32>
    %18 = vector.shape_cast %17 : vector<1x49x49xf32> to vector<49x49xf32>
    %19 = vector.shape_cast %16 : vector<49x49xf32> to vector<1x49x49xf32>
    tpu.vector_store %arg1[%c4_17, %c0_18, %c0_19], %19 {strides = array<i32>} : memref<12x49x49xf32, #tpu.memory_space<vmem>>, vector<1x49x49xf32>,
    %c0_20 = arith.constant 0 : index
    %c5 = arith.constant 5 : index
    %20 = tpu.strided_load %arg0[%c0_20, %c5] {strides = array<i32: 1, 12>} : memref<49x588xf32, #tpu.memory_space<vmem>>, vector<49x49xf32>
    %c5_21 = arith.constant 5 : index
    %c0_22 = arith.constant 0 : index
    %c0_23 = arith.constant 0 : index
    %21 = vector.load %arg1[%c5_21, %c0_22, %c0_23] : memref<12x49x49xf32, #tpu.memory_space<vmem>>, vector<1x49x49xf32>
    %22 = vector.shape_cast %21 : vector<1x49x49xf32> to vector<49x49xf32>
    %23 = vector.shape_cast %20 : vector<49x49xf32> to vector<1x49x49xf32>
    tpu.vector_store %arg1[%c5_21, %c0_22, %c0_23], %23 {strides = array<i32>} : memref<12x49x49xf32, #tpu.memory_space<vmem>>, vector<1x49x49xf32>,
    %c0_24 = arith.constant 0 : index
    %c6 = arith.constant 6 : index
    %24 = tpu.strided_load %arg0[%c0_24, %c6] {strides = array<i32: 1, 12>} : memref<49x588xf32, #tpu.memory_space<vmem>>, vector<49x49xf32>
    %c6_25 = arith.constant 6 : index
    %c0_26 = arith.constant 0 : index
    %c0_27 = arith.constant 0 : index
    %25 = vector.load %arg1[%c6_25, %c0_26, %c0_27] : memref<12x49x49xf32, #tpu.memory_space<vmem>>, vector<1x49x49xf32>
    %26 = vector.shape_cast %25 : vector<1x49x49xf32> to vector<49x49xf32>
    %27 = vector.shape_cast %24 : vector<49x49xf32> to vector<1x49x49xf32>
    tpu.vector_store %arg1[%c6_25, %c0_26, %c0_27], %27 {strides = array<i32>} : memref<12x49x49xf32, #tpu.memory_space<vmem>>, vector<1x49x49xf32>,
    %c0_28 = arith.constant 0 : index
    %c7 = arith.constant 7 : index
    %28 = tpu.strided_load %arg0[%c0_28, %c7] {strides = array<i32: 1, 12>} : memref<49x588xf32, #tpu.memory_space<vmem>>, vector<49x49xf32>
    %c7_29 = arith.constant 7 : index
    %c0_30 = arith.constant 0 : index
    %c0_31 = arith.constant 0 : index
    %29 = vector.load %arg1[%c7_29, %c0_30, %c0_31] : memref<12x49x49xf32, #tpu.memory_space<vmem>>, vector<1x49x49xf32>
    %30 = vector.shape_cast %29 : vector<1x49x49xf32> to vector<49x49xf32>
    %31 = vector.shape_cast %28 : vector<49x49xf32> to vector<1x49x49xf32>
    tpu.vector_store %arg1[%c7_29, %c0_30, %c0_31], %31 {strides = array<i32>} : memref<12x49x49xf32, #tpu.memory_space<vmem>>, vector<1x49x49xf32>,
    %c0_32 = arith.constant 0 : index
    %c8 = arith.constant 8 : index
    %32 = tpu.strided_load %arg0[%c0_32, %c8] {strides = array<i32: 1, 12>} : memref<49x588xf32, #tpu.memory_space<vmem>>, vector<49x49xf32>
    %c8_33 = arith.constant 8 : index
    %c0_34 = arith.constant 0 : index
    %c0_35 = arith.constant 0 : index
    %33 = vector.load %arg1[%c8_33, %c0_34, %c0_35] : memref<12x49x49xf32, #tpu.memory_space<vmem>>, vector<1x49x49xf32>
    %34 = vector.shape_cast %33 : vector<1x49x49xf32> to vector<49x49xf32>
    %35 = vector.shape_cast %32 : vector<49x49xf32> to vector<1x49x49xf32>
    tpu.vector_store %arg1[%c8_33, %c0_34, %c0_35], %35 {strides = array<i32>} : memref<12x49x49xf32, #tpu.memory_space<vmem>>, vector<1x49x49xf32>,
    %c0_36 = arith.constant 0 : index
    %c9 = arith.constant 9 : index
    %36 = tpu.strided_load %arg0[%c0_36, %c9] {strides = array<i32: 1, 12>} : memref<49x588xf32, #tpu.memory_space<vmem>>, vector<49x49xf32>
    %c9_37 = arith.constant 9 : index
    %c0_38 = arith.constant 0 : index
    %c0_39 = arith.constant 0 : index
    %37 = vector.load %arg1[%c9_37, %c0_38, %c0_39] : memref<12x49x49xf32, #tpu.memory_space<vmem>>, vector<1x49x49xf32>
    %38 = vector.shape_cast %37 : vector<1x49x49xf32> to vector<49x49xf32>
    %39 = vector.shape_cast %36 : vector<49x49xf32> to vector<1x49x49xf32>
    tpu.vector_store %arg1[%c9_37, %c0_38, %c0_39], %39 {strides = array<i32>} : memref<12x49x49xf32, #tpu.memory_space<vmem>>, vector<1x49x49xf32>,
    %c0_40 = arith.constant 0 : index
    %c10 = arith.constant 10 : index
    %40 = tpu.strided_load %arg0[%c0_40, %c10] {strides = array<i32: 1, 12>} : memref<49x588xf32, #tpu.memory_space<vmem>>, vector<49x49xf32>
    %c10_41 = arith.constant 10 : index
    %c0_42 = arith.constant 0 : index
    %c0_43 = arith.constant 0 : index
    %41 = vector.load %arg1[%c10_41, %c0_42, %c0_43] : memref<12x49x49xf32, #tpu.memory_space<vmem>>, vector<1x49x49xf32>
    %42 = vector.shape_cast %41 : vector<1x49x49xf32> to vector<49x49xf32>
    %43 = vector.shape_cast %40 : vector<49x49xf32> to vector<1x49x49xf32>
    tpu.vector_store %arg1[%c10_41, %c0_42, %c0_43], %43 {strides = array<i32>} : memref<12x49x49xf32, #tpu.memory_space<vmem>>, vector<1x49x49xf32>,
    %c0_44 = arith.constant 0 : index
    %c11 = arith.constant 11 : index
    %44 = tpu.strided_load %arg0[%c0_44, %c11] {strides = array<i32: 1, 12>} : memref<49x588xf32, #tpu.memory_space<vmem>>, vector<49x49xf32>
    %c11_45 = arith.constant 11 : index
    %c0_46 = arith.constant 0 : index
    %c0_47 = arith.constant 0 : index
    %45 = vector.load %arg1[%c11_45, %c0_46, %c0_47] : memref<12x49x49xf32, #tpu.memory_space<vmem>>, vector<1x49x49xf32>
    %46 = vector.shape_cast %45 : vector<1x49x49xf32> to vector<49x49xf32>
    %47 = vector.shape_cast %44 : vector<49x49xf32> to vector<1x49x49xf32>
    tpu.vector_store %arg1[%c11_45, %c0_46, %c0_47], %47 {strides = array<i32>} : memref<12x49x49xf32, #tpu.memory_space<vmem>>, vector<1x49x49xf32>,
    return
  }
}

module attributes {stable_mosaic.version = 11 : i64} {
  func.func @_permute_kernel_transpose2d(%arg0: memref<2401x12xf32, #tpu.memory_space<vmem>>, %arg1: memref<12x2401xf32, #tpu.memory_space<vmem>>) attributes {dimension_semantics = [], scalar_prefetch = 0 : i64, scratch_operands = 0 : i64, tpu.core_type = #tpu.core_type<tc>} {
    %c0 = arith.constant 0 : index
    %c0_0 = arith.constant 0 : index
    %0 = vector.load %arg0[%c0, %c0_0] : memref<2401x12xf32, #tpu.memory_space<vmem>>, vector<2401x12xf32>
    %1 = tpu.transpose %0, [1, 0] : vector<2401x12xf32> -> vector<12x2401xf32>
    %c0_1 = arith.constant 0 : index
    %c0_2 = arith.constant 0 : index
    %2 = vector.load %arg1[%c0_1, %c0_2] : memref<12x2401xf32, #tpu.memory_space<vmem>>, vector<12x2401xf32>
    tpu.vector_store %arg1[%c0_1, %c0_2], %1 {strides = array<i32>} : memref<12x2401xf32, #tpu.memory_space<vmem>>, vector<12x2401xf32>,
    return
  }
}

</mosaic_0001>

<bundles_post_ra>
// kernel: _permute_201_transpose2d.1
= control target key start
LH: loop header
LB: loop body
LE: loop exit
PB: predicated region body
PF: predicated region fallthrough
CT: control target
= control target key end

     0   :  { %vm935_vm0 = vcmask 793600   ;;  %vm955_vm1 = vcmask 789504   ;;  %s1989_s0 = inlined_call_operand.vmem [shape: f32[2401,12], index: 0, kind: input, shape index: {}]   ;;  %s1990_s1 = inlined_call_operand.vmem [shape: f32[12,2401], index: 1, kind: output, shape index: {}]  }
   0x1   :  { %v8_v0 = vld [vmem:[%s1989_s0] sm:$0xff]  ;;  %v9_v1 = vld [vmem:[%s1989_s0 + $0x8] sm:$0xff]  ;;  %v10_v3 = vld [vmem:[%s1989_s0 + $0x10] sm:$0xff] }
   0x2   :  { %309 = vxpose.xlu0.b32.start [1/16] (narrow) %v8_v0, 16  ;;  %v24_v2 = vld [vmem:[%s1989_s0 + $0x80] sm:$0xff]  ;;  %v25_v4 = vld [vmem:[%s1989_s0 + $0x88] sm:$0xff]  ;;  %v11_v5 = vld [vmem:[%s1989_s0 + $0x18] sm:$0xff] }
   0x3   :  { %341 = vxpose.xlu1.b32.start [1/16] (narrow) %v24_v2, 16  ;;  %v26_v6 = vld [vmem:[%s1989_s0 + $0x90] sm:$0xff]  ;;  %v12_v7 = vld [vmem:[%s1989_s0 + $0x20] sm:$0xff]  ;;  %v27_v8 = vld [vmem:[%s1989_s0 + $0x98] sm:$0xff] }
   0x4   :  { %v13_v9 = vld [vmem:[%s1989_s0 + $0x28] sm:$0xff]  ;;  %v28_v10 = vld [vmem:[%s1989_s0 + $0xa0] sm:$0xff]  ;;  %v14_v11 = vld [vmem:[%s1989_s0 + $0x30] sm:$0xff] }
   0x5   :  { %v29_v12 = vld [vmem:[%s1989_s0 + $0xa8] sm:$0xff]  ;;  %v15_v13 = vld [vmem:[%s1989_s0 + $0x38] sm:$0xff]  ;;  %v30_v14 = vld [vmem:[%s1989_s0 + $0xb0] sm:$0xff] }
   0x6   :  { %310 = vxpose.xlu0.b32.cont [2/16] (narrow) %v9_v1, 16  ;;  %v16_v15 = vld [vmem:[%s1989_s0 + $0x40] sm:$0xff]  ;;  %v31_v16 = vld [vmem:[%s1989_s0 + $0xb8] sm:$0xff]  ;;  %v17_v17 = vld [vmem:[%s1989_s0 + $0x48] sm:$0xff] }
   0x7   :  { %342 = vxpose.xlu1.b32.cont [2/16] (narrow) %v25_v4, 16  ;;  %v32_v18 = vld [vmem:[%s1989_s0 + $0xc0] sm:$0xff]  ;;  %v18_v19 = vld [vmem:[%s1989_s0 + $0x50] sm:$0xff]  ;;  %v33_v20 = vld [vmem:[%s1989_s0 + $0xc8] sm:$0xff] }
   0x8   :  { %v19_v21 = vld [vmem:[%s1989_s0 + $0x58] sm:$0xff]  ;;  %v34_v22 = vld [vmem:[%s1989_s0 + $0xd0] sm:$0xff]  ;;  %v20_v23 = vld [vmem:[%s1989_s0 + $0x60] sm:$0xff] }
   0x9   :  { %v35_v24 = vld [vmem:[%s1989_s0 + $0xd8] sm:$0xff]  ;;  %v21_v25 = vld [vmem:[%s1989_s0 + $0x68] sm:$0xff]  ;;  %v36_v26 = vld [vmem:[%s1989_s0 + $0xe0] sm:$0xff] }
   0xa   :  { %311 = vxpose.xlu0.b32.cont [3/16] (narrow) %v10_v3, 16  ;;  %v22_v27 = vld [vmem:[%s1989_s0 + $0x70] sm:$0xff]  ;;  %v37_v28 = vld [vmem:[%s1989_s0 + $0xe8] sm:$0xff]  ;;  %v23_v29 = vld [vmem:[%s1989_s0 + $0x78] sm:$0xff] }
   0xb   :  { %343 = vxpose.xlu1.b32.cont [3/16] (narrow) %v26_v6, 16  ;;  %v38_v30 = vld [vmem:[%s1989_s0 + $0xf0] sm:$0xff]  ;;  %v40_v31 = vld [vmem:[%s1989_s0 + $0x100] sm:$0xff]  ;;  %v39_v32 = vld [vmem:[%s1989_s0 + $0xf8] sm:$0xff] }
   0xc   :  { %v41_v33 = vld [vmem:[%s1989_s0 + $0x108] sm:$0xff]  ;;  %v56_v34 = vld [vmem:[%s1989_s0 + $0x180] sm:$0xff]  ;;  %v42_v35 = vld [vmem:[%s1989_s0 + $0x110] sm:$0xff] }
   0xd   :  { %v57_v36 = vld [vmem:[%s1989_s0 + $0x188] sm:$0xff]  ;;  %v43_v37 = vld [vmem:[%s1989_s0 + $0x118] sm:$0xff]  ;;  %v58_v38 = vld [vmem:[%s1989_s0 + $0x190] sm:$0xff] }
   0xe   :  { %312 = vxpose.xlu0.b32.cont [4/16] (narrow) %v11_v5, 16  ;;  %v44_v39 = vld [vmem:[%s1989_s0 + $0x120] sm:$0xff]  ;;  %v59_v40 = vld [vmem:[%s1989_s0 + $0x198] sm:$0xff]  ;;  %v45_v41 = vld [vmem:[%s1989_s0 + $0x128] sm:$0xff] }
   0xf   :  { %344 = vxpose.xlu1.b32.cont [4/16] (narrow) %v27_v8, 16  ;;  %v60_v42 = vld [vmem:[%s1989_s0 + $0x1a0] sm:$0xff]  ;;  %v46_v43 = vld [vmem:[%s1989_s0 + $0x130] sm:$0xff]  ;;  %v61_v44 = vld [vmem:[%s1989_s0 + $0x1a8] sm:$0xff] }
  0x10   :  { %v47_v45 = vld [vmem:[%s1989_s0 + $0x138] sm:$0xff]  ;;  %v62_v46 = vld [vmem:[%s1989_s0 + $0x1b0] sm:$0xff]  ;;  %v48_v47 = vld [vmem:[%s1989_s0 + $0x140] sm:$0xff] }
  0x11   :  { %v63_v48 = vld [vmem:[%s1989_s0 + $0x1b8] sm:$0xff]  ;;  %v49_v49 = vld [vmem:[%s1989_s0 + $0x148] sm:$0xff]  ;;  %v64_v50 = vld [vmem:[%s1989_s0 + $0x1c0] sm:$0xff] }
  0x12   :  { %313 = vxpose.xlu0.b32.cont [5/16] (narrow) %v12_v7, 16  ;;  %v50_v51 = vld [vmem:[%s1989_s0 + $0x150] sm:$0xff]  ;;  %v65_v52 = vld [vmem:[%s1989_s0 + $0x1c8] sm:$0xff]  ;;  %v51_v53 = vld [vmem:[%s1989_s0 + $0x158] sm:$0xff] }
  0x13   :  { %345 = vxpose.xlu1.b32.cont [5/16] (narrow) %v28_v10, 16  ;;  %v66_v54 = vld [vmem:[%s1989_s0 + $0x1d0] sm:$0xff]  ;;  %v52_v55 = vld [vmem:[%s1989_s0 + $0x160] sm:$0xff]  ;;  %v67_v56 = vld [vmem:[%s1989_s0 + $0x1d8] sm:$0xff] }
  0x14   :  { %v53_v57 = vld [vmem:[%s1989_s0 + $0x168] sm:$0xff]  ;;  %v68_v58 = vld [vmem:[%s1989_s0 + $0x1e0] sm:$0xff]  ;;  %v54_v59 = vld [vmem:[%s1989_s0 + $0x170] sm:$0xff] }
  0x15   :  { %v69_v60 = vld [vmem:[%s1989_s0 + $0x1e8] sm:$0xff]  ;;  %v55_v61 = vld [vmem:[%s1989_s0 + $0x178] sm:$0xff]  ;;  %v70_v62 = vld [vmem:[%s1989_s0 + $0x1f0] sm:$0xff] }
  0x16   :  { %314 = vxpose.xlu0.b32.cont [6/16] (narrow) %v13_v9, 16  ;;  %v72_v63 = vld [vmem:[%s1989_s0 + $0x200] sm:$0xff]  ;;  %v71_v0 = vld [vmem:[%s1989_s0 + $0x1f8] sm:$0xff]  ;;  %v73_v1 = vld [vmem:[%s1989_s0 + $0x208] sm:$0xff] }
  0x17   :  { %346 = vxpose.xlu1.b32.cont [6/16] (narrow) %v29_v12, 16  ;;  %v88_v2 = vld [vmem:[%s1989_s0 + $0x280] sm:$0xff]  ;;  %v74_v3 = vld [vmem:[%s1989_s0 + $0x210] sm:$0xff]  ;;  %v89_v4 = vld [vmem:[%s1989_s0 + $0x288] sm:$0xff] }
  0x18   :  { %v75_v5 = vld [vmem:[%s1989_s0 + $0x218] sm:$0xff]  ;;  %v90_v6 = vld [vmem:[%s1989_s0 + $0x290] sm:$0xff]  ;;  %v76_v7 = vld [vmem:[%s1989_s0 + $0x220] sm:$0xff] }
  0x19   :  { %v91_v8 = vld [vmem:[%s1989_s0 + $0x298] sm:$0xff]  ;;  %v77_v9 = vld [vmem:[%s1989_s0 + $0x228] sm:$0xff]  ;;  %v92_v10 = vld [vmem:[%s1989_s0 + $0x2a0] sm:$0xff] }
  0x1a   :  { %315 = vxpose.xlu0.b32.cont [7/16] (narrow) %v14_v11, 16  ;;  %v78_v11 = vld [vmem:[%s1989_s0 + $0x230] sm:$0xff]  ;;  %v93_v12 = vld [vmem:[%s1989_s0 + $0x2a8] sm:$0xff] }
  0x1b   :  { %347 = vxpose.xlu1.b32.cont [7/16] (narrow) %v30_v14, 16  ;;  %v94_v14 = vld [vmem:[%s1989_s0 + $0x2b0] sm:$0xff] }
  0x1e   :  { %316 = vxpose.xlu0.b32.cont [8/16] (narrow) %v15_v13, 16  ;;  %v79_v13 = vld [vmem:[%s1989_s0 + $0x238] sm:$0xff] }
  0x1f   :  { %348 = vxpose.xlu1.b32.cont [8/16] (narrow) %v31_v16, 16  ;;  %v95_v16 = vld [vmem:[%s1989_s0 + $0x2b8] sm:$0xff] }
  0x22   :  { %317 = vxpose.xlu0.b32.cont [9/16] (narrow) %v16_v15, 16  ;;  %v80_v15 = vld [vmem:[%s1989_s0 + $0x240] sm:$0xff] }
  0x23   :  { %349 = vxpose.xlu1.b32.cont [9/16] (narrow) %v32_v18, 16  ;;  %v96_v18 = vld [vmem:[%s1989_s0 + $0x2c0] sm:$0xff] }
  0x26   :  { %318 = vxpose.xlu0.b32.cont [10/16] (narrow) %v17_v17, 16  ;;  %v81_v17 = vld [vmem:[%s1989_s0 + $0x248] sm:$0xff] }
  0x27   :  { %350 = vxpose.xlu1.b32.cont [10/16] (narrow) %v33_v20, 16  ;;  %v97_v20 = vld [vmem:[%s1989_s0 + $0x2c8] sm:$0xff] }
  0x2a   :  { %319 = vxpose.xlu0.b32.cont [11/16] (narrow) %v18_v19, 16  ;;  %v82_v19 = vld [vmem:[%s1989_s0 + $0x250] sm:$0xff] }
  0x2b   :  { %351 = vxpose.xlu1.b32.cont [11/16] (narrow) %v34_v22, 16  ;;  %v98_v22 = vld [vmem:[%s1989_s0 + $0x2d0] sm:$0xff] }
  0x2e   :  { %320 = vxpose.xlu0.b32.cont [12/16] (narrow) %v19_v21, 16  ;;  %v83_v21 = vld [vmem:[%s1989_s0 + $0x258] sm:$0xff] }
  0x2f   :  { %352 = vxpose.xlu1.b32.cont [12/16] (narrow) %v35_v24, 16  ;;  %v99_v24 = vld [vmem:[%s1989_s0 + $0x2d8] sm:$0xff] }
  0x32   :  { %321 = vxpose.xlu0.b32.cont [13/16] (narrow) %v20_v23, 16  ;;  %v84_v23 = vld [vmem:[%s1989_s0 + $0x260] sm:$0xff] }
  0x33   :  { %353 = vxpose.xlu1.b32.cont [13/16] (narrow) %v36_v26, 16  ;;  %v100_v26 = vld [vmem:[%s1989_s0 + $0x2e0] sm:$0xff] }
  0x36   :  { %322 = vxpose.xlu0.b32.cont [14/16] (narrow) %v21_v25, 16  ;;  %v85_v25 = vld [vmem:[%s1989_s0 + $0x268] sm:$0xff] }
  0x37   :  { %354 = vxpose.xlu1.b32.cont [14/16] (narrow) %v37_v28, 16  ;;  %v101_v28 = vld [vmem:[%s1989_s0 + $0x2e8] sm:$0xff] }
  0x3a   :  { %323 = vxpose.xlu0.b32.cont [15/16] (narrow) %v22_v27, 16  ;;  %v86_v27 = vld [vmem:[%s1989_s0 + $0x270] sm:$0xff] }
  0x3b   :  { %355 = vxpose.xlu1.b32.cont [15/16] (narrow) %v38_v30, 16  ;;  %v102_v30 = vld [vmem:[%s1989_s0 + $0x2f0] sm:$0xff] }
  0x3e   :  { %324 = vxpose.xlu0.b32.end [16/16] (narrow) %v23_v29, 16  ;;  %v87_v29 = vld [vmem:[%s1989_s0 + $0x278] sm:$0xff] }
  0x3f   :  { %356 = vxpose.xlu1.b32.end [16/16] (narrow) %v39_v32, 16  ;;  %v103_v32 = vld [vmem:[%s1989_s0 + $0x2f8] sm:$0xff] }
  0x42   :  { %373 = vxpose.xlu0.b32.start [1/16] (narrow) %v40_v31, 16  ;;  %v104_v31 = vld [vmem:[%s1989_s0 + $0x300] sm:$0xff] }
  0x43   :  { %405 = vxpose.xlu1.b32.start [1/16] (narrow) %v56_v34, 16  ;;  %v120_v34 = vld [vmem:[%s1989_s0 + $0x380] sm:$0xff] }
  0x46   :  { %374 = vxpose.xlu0.b32.cont [2/16] (narrow) %v41_v33, 16  ;;  %v105_v33 = vld [vmem:[%s1989_s0 + $0x308] sm:$0xff] }
  0x47   :  { %406 = vxpose.xlu1.b32.cont [2/16] (narrow) %v57_v36, 16  ;;  %v121_v36 = vld [vmem:[%s1989_s0 + $0x388] sm:$0xff] }
  0x4a   :  { %375 = vxpose.xlu0.b32.cont [3/16] (narrow) %v42_v35, 16  ;;  %v106_v35 = vld [vmem:[%s1989_s0 + $0x310] sm:$0xff] }
  0x4b   :  { %407 = vxpose.xlu1.b32.cont [3/16] (narrow) %v58_v38, 16  ;;  %v122_v38 = vld [vmem:[%s1989_s0 + $0x390] sm:$0xff] }
  0x4e   :  { %376 = vxpose.xlu0.b32.cont [4/16] (narrow) %v43_v37, 16  ;;  %v107_v37 = vld [vmem:[%s1989_s0 + $0x318] sm:$0xff] }
  0x4f   :  { %408 = vxpose.xlu1.b32.cont [4/16] (narrow) %v59_v40, 16  ;;  %v123_v40 = vld [vmem:[%s1989_s0 + $0x398] sm:$0xff] }
  0x52   :  { %377 = vxpose.xlu0.b32.cont [5/16] (narrow) %v44_v39, 16  ;;  %v108_v39 = vld [vmem:[%s1989_s0 + $0x320] sm:$0xff] }
  0x53   :  { %409 = vxpose.xlu1.b32.cont [5/16] (narrow) %v60_v42, 16  ;;  %v124_v42 = vld [vmem:[%s1989_s0 + $0x3a0] sm:$0xff] }
  0x56   :  { %378 = vxpose.xlu0.b32.cont [6/16] (narrow) %v45_v41, 16  ;;  %v109_v41 = vld [vmem:[%s1989_s0 + $0x328] sm:$0xff] }
  0x57   :  { %410 = vxpose.xlu1.b32.cont [6/16] (narrow) %v61_v44, 16  ;;  %v125_v44 = vld [vmem:[%s1989_s0 + $0x3a8] sm:$0xff] }
  0x5a   :  { %379 = vxpose.xlu0.b32.cont [7/16] (narrow) %v46_v43, 16  ;;  %v110_v43 = vld [vmem:[%s1989_s0 + $0x330] sm:$0xff] }
  0x5b   :  { %411 = vxpose.xlu1.b32.cont [7/16] (narrow) %v62_v46, 16  ;;  %v126_v46 = vld [vmem:[%s1989_s0 + $0x3b0] sm:$0xff] }
  0x5e   :  { %380 = vxpose.xlu0.b32.cont [8/16] (narrow) %v47_v45, 16  ;;  %v111_v45 = vld [vmem:[%s1989_s0 + $0x338] sm:$0xff] }
  0x5f   :  { %412 = vxpose.xlu1.b32.cont [8/16] (narrow) %v63_v48, 16  ;;  %v127_v48 = vld [vmem:[%s1989_s0 + $0x3b8] sm:$0xff] }
  0x62   :  { %381 = vxpose.xlu0.b32.cont [9/16] (narrow) %v48_v47, 16  ;;  %v112_v47 = vld [vmem:[%s1989_s0 + $0x340] sm:$0xff] }
  0x63   :  { %413 = vxpose.xlu1.b32.cont [9/16] (narrow) %v64_v50, 16  ;;  %v128_v50 = vld [vmem:[%s1989_s0 + $0x3c0] sm:$0xff] }
  0x66   :  { %382 = vxpose.xlu0.b32.cont [10/16] (narrow) %v49_v49, 16  ;;  %v113_v49 = vld [vmem:[%s1989_s0 + $0x348] sm:$0xff] }
  0x67   :  { %414 = vxpose.xlu1.b32.cont [10/16] (narrow) %v65_v52, 16  ;;  %v129_v52 = vld [vmem:[%s1989_s0 + $0x3c8] sm:$0xff] }
  0x6a   :  { %383 = vxpose.xlu0.b32.cont [11/16] (narrow) %v50_v51, 16  ;;  %v114_v51 = vld [vmem:[%s1989_s0 + $0x350] sm:$0xff] }
  0x6b   :  { %415 = vxpose.xlu1.b32.cont [11/16] (narrow) %v66_v54, 16  ;;  %v130_v54 = vld [vmem:[%s1989_s0 + $0x3d0] sm:$0xff] }
  0x6e   :  { %384 = vxpose.xlu0.b32.cont [12/16] (narrow) %v51_v53, 16  ;;  %v115_v53 = vld [vmem:[%s1989_s0 + $0x358] sm:$0xff] }
  0x6f   :  { %416 = vxpose.xlu1.b32.cont [12/16] (narrow) %v67_v56, 16  ;;  %v131_v56 = vld [vmem:[%s1989_s0 + $0x3d8] sm:$0xff] }
  0x72   :  { %385 = vxpose.xlu0.b32.cont [13/16] (narrow) %v52_v55, 16  ;;  %v116_v55 = vld [vmem:[%s1989_s0 + $0x360] sm:$0xff] }
  0x73   :  { %417 = vxpose.xlu1.b32.cont [13/16] (narrow) %v68_v58, 16  ;;  %v132_v58 = vld [vmem:[%s1989_s0 + $0x3e0] sm:$0xff] }
  0x76   :  { %386 = vxpose.xlu0.b32.cont [14/16] (narrow) %v53_v57, 16  ;;  %v117_v57 = vld [vmem:[%s1989_s0 + $0x368] sm:$0xff] }
  0x77   :  { %418 = vxpose.xlu1.b32.cont [14/16] (narrow) %v69_v60, 16  ;;  %v133_v60 = vld [vmem:[%s1989_s0 + $0x3e8] sm:$0xff] }
  0x7a   :  { %387 = vxpose.xlu0.b32.cont [15/16] (narrow) %v54_v59, 16  ;;  %v118_v59 = vld [vmem:[%s1989_s0 + $0x370] sm:$0xff] }
  0x7b   :  { %419 = vxpose.xlu1.b32.cont [15/16] (narrow) %v70_v62, 16  ;;  %v134_v62 = vld [vmem:[%s1989_s0 + $0x3f0] sm:$0xff] }
  0x7e   :  { %388 = vxpose.xlu0.b32.end [16/16] (narrow) %v55_v61, 16  ;;  %v119_v61 = vld [vmem:[%s1989_s0 + $0x378] sm:$0xff] }
  0x7f   :  { %420 = vxpose.xlu1.b32.end [16/16] (narrow) %v71_v0, 16  ;;  %v135_v0 = vld [vmem:[%s1989_s0 + $0x3f8] sm:$0xff] }
  0x82   :  { %437 = vxpose.xlu0.b32.start [1/16] (narrow) %v72_v63, 16  ;;  %v136_v63 = vld [vmem:[%s1989_s0 + $0x400] sm:$0xff] }
  0x83   :  { %469 = vxpose.xlu1.b32.start [1/16] (narrow) %v88_v2, 16  ;;  %v152_v2 = vld [vmem:[%s1989_s0 + $0x480] sm:$0xff] }
  0x86   :  { %438 = vxpose.xlu0.b32.cont [2/16] (narrow) %v73_v1, 16  ;;  %v137_v1 = vld [vmem:[%s1989_s0 + $0x408] sm:$0xff] }
  0x87   :  { %470 = vxpose.xlu1.b32.cont [2/16] (narrow) %v89_v4, 16  ;;  %v153_v4 = vld [vmem:[%s1989_s0 + $0x488] sm:$0xff] }
  0x8a   :  { %439 = vxpose.xlu0.b32.cont [3/16] (narrow) %v74_v3, 16  ;;  %v138_v3 = vld [vmem:[%s1989_s0 + $0x410] sm:$0xff] }
  0x8b   :  { %471 = vxpose.xlu1.b32.cont [3/16] (narrow) %v90_v6, 16  ;;  %v154_v6 = vld [vmem:[%s1989_s0 + $0x490] sm:$0xff] }
  0x8e   :  { %440 = vxpose.xlu0.b32.cont [4/16] (narrow) %v75_v5, 16  ;;  %v139_v5 = vld [vmem:[%s1989_s0 + $0x418] sm:$0xff] }
  0x8f   :  { %472 = vxpose.xlu1.b32.cont [4/16] (narrow) %v91_v8, 16  ;;  %v155_v8 = vld [vmem:[%s1989_s0 + $0x498] sm:$0xff] }
  0x92   :  { %441 = vxpose.xlu0.b32.cont [5/16] (narrow) %v76_v7, 16  ;;  %v140_v7 = vld [vmem:[%s1989_s0 + $0x420] sm:$0xff] }
  0x93   :  { %473 = vxpose.xlu1.b32.cont [5/16] (narrow) %v92_v10, 16  ;;  %v156_v10 = vld [vmem:[%s1989_s0 + $0x4a0] sm:$0xff] }
  0x96   :  { %442 = vxpose.xlu0.b32.cont [6/16] (narrow) %v77_v9, 16  ;;  %v141_v9 = vld [vmem:[%s1989_s0 + $0x428] sm:$0xff] }
  0x97   :  { %474 = vxpose.xlu1.b32.cont [6/16] (narrow) %v93_v12, 16  ;;  %v157_v12 = vld [vmem:[%s1989_s0 + $0x4a8] sm:$0xff] }
  0x9a   :  { %443 = vxpose.xlu0.b32.cont [7/16] (narrow) %v78_v11, 16  ;;  %v142_v11 = vld [vmem:[%s1989_s0 + $0x430] sm:$0xff] }
  0x9b   :  { %475 = vxpose.xlu1.b32.cont [7/16] (narrow) %v94_v14, 16  ;;  %v158_v14 = vld [vmem:[%s1989_s0 + $0x4b0] sm:$0xff] }
  0x9e   :  { %444 = vxpose.xlu0.b32.cont [8/16] (narrow) %v79_v13, 16  ;;  %v143_v13 = vld [vmem:[%s1989_s0 + $0x438] sm:$0xff] }
  0x9f   :  { %476 = vxpose.xlu1.b32.cont [8/16] (narrow) %v95_v16, 16  ;;  %v159_v16 = vld [vmem:[%s1989_s0 + $0x4b8] sm:$0xff] }
  0xa2   :  { %445 = vxpose.xlu0.b32.cont [9/16] (narrow) %v80_v15, 16  ;;  %v144_v15 = vld [vmem:[%s1989_s0 + $0x440] sm:$0xff] }
  0xa3   :  { %477 = vxpose.xlu1.b32.cont [9/16] (narrow) %v96_v18, 16  ;;  %v160_v18 = vld [vmem:[%s1989_s0 + $0x4c0] sm:$0xff] }
  0xa6   :  { %446 = vxpose.xlu0.b32.cont [10/16] (narrow) %v81_v17, 16  ;;  %v145_v17 = vld [vmem:[%s1989_s0 + $0x448] sm:$0xff] }
  0xa7   :  { %478 = vxpose.xlu1.b32.cont [10/16] (narrow) %v97_v20, 16  ;;  %v161_v20 = vld [vmem:[%s1989_s0 + $0x4c8] sm:$0xff] }
  0xaa   :  { %447 = vxpose.xlu0.b32.cont [11/16] (narrow) %v82_v19, 16  ;;  %v146_v19 = vld [vmem:[%s1989_s0 + $0x450] sm:$0xff] }
  0xab   :  { %479 = vxpose.xlu1.b32.cont [11/16] (narrow) %v98_v22, 16  ;;  %v162_v22 = vld [vmem:[%s1989_s0 + $0x4d0] sm:$0xff] }
  0xae   :  { %448 = vxpose.xlu0.b32.cont [12/16] (narrow) %v83_v21, 16  ;;  %v147_v21 = vld [vmem:[%s1989_s0 + $0x458] sm:$0xff] }
  0xaf   :  { %480 = vxpose.xlu1.b32.cont [12/16] (narrow) %v99_v24, 16  ;;  %v163_v24 = vld [vmem:[%s1989_s0 + $0x4d8] sm:$0xff] }
  0xb2   :  { %449 = vxpose.xlu0.b32.cont [13/16] (narrow) %v84_v23, 16  ;;  %v148_v23 = vld [vmem:[%s1989_s0 + $0x460] sm:$0xff] }
  0xb3   :  { %481 = vxpose.xlu1.b32.cont [13/16] (narrow) %v100_v26, 16  ;;  %v164_v26 = vld [vmem:[%s1989_s0 + $0x4e0] sm:$0xff] }
  0xb6   :  { %450 = vxpose.xlu0.b32.cont [14/16] (narrow) %v85_v25, 16  ;;  %v149_v25 = vld [vmem:[%s1989_s0 + $0x468] sm:$0xff] }
  0xb7   :  { %482 = vxpose.xlu1.b32.cont [14/16] (narrow) %v101_v28, 16  ;;  %v165_v28 = vld [vmem:[%s1989_s0 + $0x4e8] sm:$0xff] }
  0xba   :  { %451 = vxpose.xlu0.b32.cont [15/16] (narrow) %v86_v27, 16  ;;  %v150_v27 = vld [vmem:[%s1989_s0 + $0x470] sm:$0xff] }
  0xbb   :  { %483 = vxpose.xlu1.b32.cont [15/16] (narrow) %v102_v30, 16  ;;  %v166_v30 = vld [vmem:[%s1989_s0 + $0x4f0] sm:$0xff] }
  0xbe   :  { %452 = vxpose.xlu0.b32.end [16/16] (narrow) %v87_v29, 16  ;;  %v151_v29 = vld [vmem:[%s1989_s0 + $0x478] sm:$0xff] }
  0xbf   :  { %484 = vxpose.xlu1.b32.end [16/16] (narrow) %v103_v32, 16  ;;  %v167_v32 = vld [vmem:[%s1989_s0 + $0x4f8] sm:$0xff] }
  0xc2   :  { %501 = vxpose.xlu0.b32.start [1/16] (narrow) %v104_v31, 16  ;;  %v168_v31 = vld [vmem:[%s1989_s0 + $0x500] sm:$0xff] }
  0xc3   :  { %533 = vxpose.xlu1.b32.start [1/16] (narrow) %v120_v34, 16  ;;  %v184_v34 = vld [vmem:[%s1989_s0 + $0x580] sm:$0xff] }
  0xc6   :  { %502 = vxpose.xlu0.b32.cont [2/16] (narrow) %v105_v33, 16  ;;  %v169_v33 = vld [vmem:[%s1989_s0 + $0x508] sm:$0xff] }
  0xc7   :  { %534 = vxpose.xlu1.b32.cont [2/16] (narrow) %v121_v36, 16  ;;  %v185_v36 = vld [vmem:[%s1989_s0 + $0x588] sm:$0xff] }
  0xca   :  { %503 = vxpose.xlu0.b32.cont [3/16] (narrow) %v106_v35, 16  ;;  %v170_v35 = vld [vmem:[%s1989_s0 + $0x510] sm:$0xff] }
  0xcb   :  { %535 = vxpose.xlu1.b32.cont [3/16] (narrow) %v122_v38, 16  ;;  %v186_v38 = vld [vmem:[%s1989_s0 + $0x590] sm:$0xff] }
  0xce   :  { %504 = vxpose.xlu0.b32.cont [4/16] (narrow) %v107_v37, 16  ;;  %v171_v37 = vld [vmem:[%s1989_s0 + $0x518] sm:$0xff] }
  0xcf   :  { %536 = vxpose.xlu1.b32.cont [4/16] (narrow) %v123_v40, 16  ;;  %v187_v40 = vld [vmem:[%s1989_s0 + $0x598] sm:$0xff] }
  0xd2   :  { %505 = vxpose.xlu0.b32.cont [5/16] (narrow) %v108_v39, 16  ;;  %v172_v39 = vld [vmem:[%s1989_s0 + $0x520] sm:$0xff] }
  0xd3   :  { %537 = vxpose.xlu1.b32.cont [5/16] (narrow) %v124_v42, 16  ;;  %v188_v42 = vld [vmem:[%s1989_s0 + $0x5a0] sm:$0xff] }
  0xd6   :  { %506 = vxpose.xlu0.b32.cont [6/16] (narrow) %v109_v41, 16  ;;  %v173_v41 = vld [vmem:[%s1989_s0 + $0x528] sm:$0xff] }
  0xd7   :  { %538 = vxpose.xlu1.b32.cont [6/16] (narrow) %v125_v44, 16  ;;  %v189_v44 = vld [vmem:[%s1989_s0 + $0x5a8] sm:$0xff] }
  0xda   :  { %507 = vxpose.xlu0.b32.cont [7/16] (narrow) %v110_v43, 16  ;;  %v174_v43 = vld [vmem:[%s1989_s0 + $0x530] sm:$0xff] }
  0xdb   :  { %539 = vxpose.xlu1.b32.cont [7/16] (narrow) %v126_v46, 16  ;;  %v190_v46 = vld [vmem:[%s1989_s0 + $0x5b0] sm:$0xff] }
  0xde   :  { %508 = vxpose.xlu0.b32.cont [8/16] (narrow) %v111_v45, 16  ;;  %v175_v45 = vld [vmem:[%s1989_s0 + $0x538] sm:$0xff] }
  0xdf   :  { %540 = vxpose.xlu1.b32.cont [8/16] (narrow) %v127_v48, 16  ;;  %v191_v48 = vld [vmem:[%s1989_s0 + $0x5b8] sm:$0xff] }
  0xe2   :  { %509 = vxpose.xlu0.b32.cont [9/16] (narrow) %v112_v47, 16  ;;  %v176_v47 = vld [vmem:[%s1989_s0 + $0x540] sm:$0xff] }
  0xe3   :  { %541 = vxpose.xlu1.b32.cont [9/16] (narrow) %v128_v50, 16  ;;  %v192_v50 = vld [vmem:[%s1989_s0 + $0x5c0] sm:$0xff] }
  0xe6   :  { %510 = vxpose.xlu0.b32.cont [10/16] (narrow) %v113_v49, 16  ;;  %v177_v49 = vld [vmem:[%s1989_s0 + $0x548] sm:$0xff] }
  0xe7   :  { %542 = vxpose.xlu1.b32.cont [10/16] (narrow) %v129_v52, 16  ;;  %v193_v52 = vld [vmem:[%s1989_s0 + $0x5c8] sm:$0xff] }
  0xea   :  { %511 = vxpose.xlu0.b32.cont [11/16] (narrow) %v114_v51, 16  ;;  %v178_v51 = vld [vmem:[%s1989_s0 + $0x550] sm:$0xff] }
  0xeb   :  { %543 = vxpose.xlu1.b32.cont [11/16] (narrow) %v130_v54, 16  ;;  %v194_v54 = vld [vmem:[%s1989_s0 + $0x5d0] sm:$0xff] }
  0xee   :  { %512 = vxpose.xlu0.b32.cont [12/16] (narrow) %v115_v53, 16  ;;  %v179_v53 = vld [vmem:[%s1989_s0 + $0x558] sm:$0xff] }
  0xef   :  { %544 = vxpose.xlu1.b32.cont [12/16] (narrow) %v131_v56, 16  ;;  %v195_v56 = vld [vmem:[%s1989_s0 + $0x5d8] sm:$0xff] }
  0xf2   :  { %513 = vxpose.xlu0.b32.cont [13/16] (narrow) %v116_v55, 16  ;;  %v180_v55 = vld [vmem:[%s1989_s0 + $0x560] sm:$0xff] }
  0xf3   :  { %545 = vxpose.xlu1.b32.cont [13/16] (narrow) %v132_v58, 16  ;;  %v196_v58 = vld [vmem:[%s1989_s0 + $0x5e0] sm:$0xff] }
  0xf6   :  { %514 = vxpose.xlu0.b32.cont [14/16] (narrow) %v117_v57, 16  ;;  %v181_v57 = vld [vmem:[%s1989_s0 + $0x568] sm:$0xff] }
  0xf7   :  { %546 = vxpose.xlu1.b32.cont [14/16] (narrow) %v133_v60, 16  ;;  %v197_v60 = vld [vmem:[%s1989_s0 + $0x5e8] sm:$0xff] }
  0xfa   :  { %515 = vxpose.xlu0.b32.cont [15/16] (narrow) %v118_v59, 16  ;;  %v182_v59 = vld [vmem:[%s1989_s0 + $0x570] sm:$0xff] }
  0xfb   :  { %547 = vxpose.xlu1.b32.cont [15/16] (narrow) %v134_v62, 16  ;;  %v198_v62 = vld [vmem:[%s1989_s0 + $0x5f0] sm:$0xff] }
  0xfe   :  { %516 = vxpose.xlu0.b32.end [16/16] (narrow) %v119_v61, 16  ;;  %v183_v61 = vld [vmem:[%s1989_s0 + $0x578] sm:$0xff] }
  0xff   :  { %548 = vxpose.xlu1.b32.end [16/16] (narrow) %v135_v0, 16  ;;  %v199_v0 = vld [vmem:[%s1989_s0 + $0x5f8] sm:$0xff] }
 0x102   :  { %565 = vxpose.xlu0.b32.start [1/16] (narrow) %v136_v63, 16  ;;  %v200_v63 = vld [vmem:[%s1989_s0 + $0x600] sm:$0xff] }
 0x103   :  { %597 = vxpose.xlu1.b32.start [1/16] (narrow) %v152_v2, 16  ;;  %v216_v2 = vld [vmem:[%s1989_s0 + $0x680] sm:$0xff] }
 0x106   :  { %566 = vxpose.xlu0.b32.cont [2/16] (narrow) %v137_v1, 16  ;;  %v201_v1 = vld [vmem:[%s1989_s0 + $0x608] sm:$0xff] }
 0x107   :  { %598 = vxpose.xlu1.b32.cont [2/16] (narrow) %v153_v4, 16  ;;  %v217_v4 = vld [vmem:[%s1989_s0 + $0x688] sm:$0xff] }
 0x10a   :  { %567 = vxpose.xlu0.b32.cont [3/16] (narrow) %v138_v3, 16  ;;  %v202_v3 = vld [vmem:[%s1989_s0 + $0x610] sm:$0xff] }
 0x10b   :  { %599 = vxpose.xlu1.b32.cont [3/16] (narrow) %v154_v6, 16  ;;  %v218_v6 = vld [vmem:[%s1989_s0 + $0x690] sm:$0xff] }
 0x10e   :  { %568 = vxpose.xlu0.b32.cont [4/16] (narrow) %v139_v5, 16  ;;  %v203_v5 = vld [vmem:[%s1989_s0 + $0x618] sm:$0xff] }
 0x10f   :  { %600 = vxpose.xlu1.b32.cont [4/16] (narrow) %v155_v8, 16  ;;  %v219_v8 = vld [vmem:[%s1989_s0 + $0x698] sm:$0xff] }
 0x112   :  { %569 = vxpose.xlu0.b32.cont [5/16] (narrow) %v140_v7, 16  ;;  %v204_v7 = vld [vmem:[%s1989_s0 + $0x620] sm:$0xff] }
 0x113   :  { %601 = vxpose.xlu1.b32.cont [5/16] (narrow) %v156_v10, 16  ;;  %v220_v10 = vld [vmem:[%s1989_s0 + $0x6a0] sm:$0xff] }
 0x116   :  { %570 = vxpose.xlu0.b32.cont [6/16] (narrow) %v141_v9, 16  ;;  %v205_v9 = vld [vmem:[%s1989_s0 + $0x628] sm:$0xff] }
 0x117   :  { %602 = vxpose.xlu1.b32.cont [6/16] (narrow) %v157_v12, 16  ;;  %v221_v12 = vld [vmem:[%s1989_s0 + $0x6a8] sm:$0xff] }
 0x11a   :  { %571 = vxpose.xlu0.b32.cont [7/16] (narrow) %v142_v11, 16  ;;  %v206_v11 = vld [vmem:[%s1989_s0 + $0x630] sm:$0xff] }
 0x11b   :  { %603 = vxpose.xlu1.b32.cont [7/16] (narrow) %v158_v14, 16  ;;  %v222_v14 = vld [vmem:[%s1989_s0 + $0x6b0] sm:$0xff] }
 0x11e   :  { %572 = vxpose.xlu0.b32.cont [8/16] (narrow) %v143_v13, 16  ;;  %v207_v13 = vld [vmem:[%s1989_s0 + $0x638] sm:$0xff] }
 0x11f   :  { %604 = vxpose.xlu1.b32.cont [8/16] (narrow) %v159_v16, 16  ;;  %v223_v16 = vld [vmem:[%s1989_s0 + $0x6b8] sm:$0xff] }
 0x122   :  { %573 = vxpose.xlu0.b32.cont [9/16] (narrow) %v144_v15, 16  ;;  %v208_v15 = vld [vmem:[%s1989_s0 + $0x640] sm:$0xff] }
 0x123   :  { %605 = vxpose.xlu1.b32.cont [9/16] (narrow) %v160_v18, 16  ;;  %v224_v18 = vld [vmem:[%s1989_s0 + $0x6c0] sm:$0xff] }
 0x126   :  { %574 = vxpose.xlu0.b32.cont [10/16] (narrow) %v145_v17, 16  ;;  %v209_v17 = vld [vmem:[%s1989_s0 + $0x648] sm:$0xff] }
 0x127   :  { %606 = vxpose.xlu1.b32.cont [10/16] (narrow) %v161_v20, 16  ;;  %v225_v20 = vld [vmem:[%s1989_s0 + $0x6c8] sm:$0xff] }
 0x12a   :  { %575 = vxpose.xlu0.b32.cont [11/16] (narrow) %v146_v19, 16  ;;  %v210_v19 = vld [vmem:[%s1989_s0 + $0x650] sm:$0xff] }
 0x12b   :  { %607 = vxpose.xlu1.b32.cont [11/16] (narrow) %v162_v22, 16  ;;  %v226_v22 = vld [vmem:[%s1989_s0 + $0x6d0] sm:$0xff] }
 0x12e   :  { %576 = vxpose.xlu0.b32.cont [12/16] (narrow) %v147_v21, 16  ;;  %v211_v21 = vld [vmem:[%s1989_s0 + $0x658] sm:$0xff] }
 0x12f   :  { %608 = vxpose.xlu1.b32.cont [12/16] (narrow) %v163_v24, 16  ;;  %v227_v24 = vld [vmem:[%s1989_s0 + $0x6d8] sm:$0xff] }
 0x132   :  { %577 = vxpose.xlu0.b32.cont [13/16] (narrow) %v148_v23, 16  ;;  %v212_v23 = vld [vmem:[%s1989_s0 + $0x660] sm:$0xff] }
 0x133   :  { %609 = vxpose.xlu1.b32.cont [13/16] (narrow) %v164_v26, 16  ;;  %v228_v26 = vld [vmem:[%s1989_s0 + $0x6e0] sm:$0xff] }
 0x136   :  { %578 = vxpose.xlu0.b32.cont [14/16] (narrow) %v149_v25, 16  ;;  %v213_v25 = vld [vmem:[%s1989_s0 + $0x668] sm:$0xff] }
 0x137   :  { %610 = vxpose.xlu1.b32.cont [14/16] (narrow) %v165_v28, 16  ;;  %v229_v28 = vld [vmem:[%s1989_s0 + $0x6e8] sm:$0xff] }
 0x13a   :  { %579 = vxpose.xlu0.b32.cont [15/16] (narrow) %v150_v27, 16  ;;  %v214_v27 = vld [vmem:[%s1989_s0 + $0x670] sm:$0xff] }
 0x13b   :  { %611 = vxpose.xlu1.b32.cont [15/16] (narrow) %v166_v30, 16  ;;  %v230_v30 = vld [vmem:[%s1989_s0 + $0x6f0] sm:$0xff] }
 0x13e   :  { %580 = vxpose.xlu0.b32.end [16/16] (narrow) %v151_v29, 16  ;;  %v215_v29 = vld [vmem:[%s1989_s0 + $0x678] sm:$0xff] }
 0x13f   :  { %612 = vxpose.xlu1.b32.end [16/16] (narrow) %v167_v32, 16  ;;  %v231_v32 = vld [vmem:[%s1989_s0 + $0x6f8] sm:$0xff] }
 0x142   :  { %629 = vxpose.xlu0.b32.start [1/16] (narrow) %v168_v31, 16  ;;  %v232_v31 = vld [vmem:[%s1989_s0 + $0x700] sm:$0xff] }
 0x143   :  { %661 = vxpose.xlu1.b32.start [1/16] (narrow) %v184_v34, 16  ;;  %v248_v34 = vld [vmem:[%s1989_s0 + $0x780] sm:$0xff] }
 0x146   :  { %630 = vxpose.xlu0.b32.cont [2/16] (narrow) %v169_v33, 16  ;;  %v233_v33 = vld [vmem:[%s1989_s0 + $0x708] sm:$0xff] }
 0x147   :  { %662 = vxpose.xlu1.b32.cont [2/16] (narrow) %v185_v36, 16  ;;  %v249_v36 = vld [vmem:[%s1989_s0 + $0x788] sm:$0xff] }
 0x14a   :  { %631 = vxpose.xlu0.b32.cont [3/16] (narrow) %v170_v35, 16  ;;  %v234_v35 = vld [vmem:[%s1989_s0 + $0x710] sm:$0xff] }
 0x14b   :  { %663 = vxpose.xlu1.b32.cont [3/16] (narrow) %v186_v38, 16  ;;  %v250_v38 = vld [vmem:[%s1989_s0 + $0x790] sm:$0xff] }
 0x14e   :  { %632 = vxpose.xlu0.b32.cont [4/16] (narrow) %v171_v37, 16  ;;  %v235_v37 = vld [vmem:[%s1989_s0 + $0x718] sm:$0xff] }
 0x14f   :  { %664 = vxpose.xlu1.b32.cont [4/16] (narrow) %v187_v40, 16  ;;  %v251_v40 = vld [vmem:[%s1989_s0 + $0x798] sm:$0xff] }
 0x152   :  { %633 = vxpose.xlu0.b32.cont [5/16] (narrow) %v172_v39, 16  ;;  %v236_v39 = vld [vmem:[%s1989_s0 + $0x720] sm:$0xff] }
 0x153   :  { %665 = vxpose.xlu1.b32.cont [5/16] (narrow) %v188_v42, 16  ;;  %v252_v42 = vld [vmem:[%s1989_s0 + $0x7a0] sm:$0xff] }
 0x156   :  { %634 = vxpose.xlu0.b32.cont [6/16] (narrow) %v173_v41, 16  ;;  %v237_v41 = vld [vmem:[%s1989_s0 + $0x728] sm:$0xff] }
 0x157   :  { %666 = vxpose.xlu1.b32.cont [6/16] (narrow) %v189_v44, 16  ;;  %v253_v44 = vld [vmem:[%s1989_s0 + $0x7a8] sm:$0xff] }
 0x15a   :  { %635 = vxpose.xlu0.b32.cont [7/16] (narrow) %v174_v43, 16  ;;  %v238_v43 = vld [vmem:[%s1989_s0 + $0x730] sm:$0xff] }
 0x15b   :  { %667 = vxpose.xlu1.b32.cont [7/16] (narrow) %v190_v46, 16  ;;  %v254_v46 = vld [vmem:[%s1989_s0 + $0x7b0] sm:$0xff] }
 0x15e   :  { %636 = vxpose.xlu0.b32.cont [8/16] (narrow) %v175_v45, 16  ;;  %v239_v45 = vld [vmem:[%s1989_s0 + $0x738] sm:$0xff] }
 0x15f   :  { %668 = vxpose.xlu1.b32.cont [8/16] (narrow) %v191_v48, 16  ;;  %v255_v48 = vld [vmem:[%s1989_s0 + $0x7b8] sm:$0xff] }
 0x162   :  { %637 = vxpose.xlu0.b32.cont [9/16] (narrow) %v176_v47, 16  ;;  %v240_v47 = vld [vmem:[%s1989_s0 + $0x740] sm:$0xff] }
 0x163   :  { %669 = vxpose.xlu1.b32.cont [9/16] (narrow) %v192_v50, 16  ;;  %v256_v50 = vld [vmem:[%s1989_s0 + $0x7c0] sm:$0xff] }
 0x166   :  { %638 = vxpose.xlu0.b32.cont [10/16] (narrow) %v177_v49, 16  ;;  %v241_v49 = vld [vmem:[%s1989_s0 + $0x748] sm:$0xff] }
 0x167   :  { %670 = vxpose.xlu1.b32.cont [10/16] (narrow) %v193_v52, 16  ;;  %v257_v52 = vld [vmem:[%s1989_s0 + $0x7c8] sm:$0xff] }
 0x16a   :  { %639 = vxpose.xlu0.b32.cont [11/16] (narrow) %v178_v51, 16  ;;  %v242_v51 = vld [vmem:[%s1989_s0 + $0x750] sm:$0xff] }
 0x16b   :  { %671 = vxpose.xlu1.b32.cont [11/16] (narrow) %v194_v54, 16  ;;  %v258_v54 = vld [vmem:[%s1989_s0 + $0x7d0] sm:$0xff] }
 0x16e   :  { %640 = vxpose.xlu0.b32.cont [12/16] (narrow) %v179_v53, 16  ;;  %v243_v53 = vld [vmem:[%s1989_s0 + $0x758] sm:$0xff] }
 0x16f   :  { %672 = vxpose.xlu1.b32.cont [12/16] (narrow) %v195_v56, 16  ;;  %v259_v56 = vld [vmem:[%s1989_s0 + $0x7d8] sm:$0xff] }
 0x172   :  { %641 = vxpose.xlu0.b32.cont [13/16] (narrow) %v180_v55, 16  ;;  %v244_v55 = vld [vmem:[%s1989_s0 + $0x760] sm:$0xff] }
 0x173   :  { %673 = vxpose.xlu1.b32.cont [13/16] (narrow) %v196_v58, 16  ;;  %v357_v58 = vpop.trf.xlu1 }
 0x174   :  { %918 = vst [vmem:[%s1990_s1 + $0x8] sm:$0xff] %v357_v58  ;;  %v294_v58 = vld [vmem:[%s1989_s0 + $0x8f0] sm:$0xff] }
 0x176   :  { %642 = vxpose.xlu0.b32.cont [14/16] (narrow) %v181_v57, 16  ;;  %v325_v57 = vpop.trf.xlu0 }
 0x177   :  { %674 = vxpose.xlu1.b32.cont [14/16] (narrow) %v197_v60, 16  ;;  %917 = vst [vmem:[%s1990_s1] sm:$0xff] %v325_v57  ;;  %v260_v60 = vld [vmem:[%s1989_s0 + $0x7e0] sm:$0xff]  ;;  %v279_v57 = vld [vmem:[%s1989_s0 + $0x878] sm:$0xff] }
 0x17a   :  { %643 = vxpose.xlu0.b32.cont [15/16] (narrow) %v182_v59, 16  ;;  %v245_v59 = vld [vmem:[%s1989_s0 + $0x768] sm:$0xff] }
 0x17b   :  { %675 = vxpose.xlu1.b32.cont [15/16] (narrow) %v198_v62, 16  ;;  %v358_v62 = vpop.trf.xlu1 }
 0x17c   :  { %938 = vst [vmem:[%s1990_s1 + $0xa0] sm:$0xf] %v358_v62  ;;  %v297_v62 = vld [vmem:[%s1989_s0 + $0x908] sm:$0xff] }
 0x17e   :  { %644 = vxpose.xlu0.b32.end [16/16] (narrow) %v183_v61, 16  ;;  %v326_v61 = vpop.trf.xlu0 }
 0x17f   :  { %676 = vxpose.xlu1.b32.end [16/16] (narrow) %v199_v0, 16  ;;  %937 = vst [vmem:[%s1990_s1 + $0x98] sm:$0xf] %v326_v61  ;;  %v261_v0 = vld [vmem:[%s1989_s0 + $0x7e8] sm:$0xff] }
 0x182   :  { %693 = vxpose.xlu0.b32.start [1/16] (narrow) %v200_v63, 16  ;;  %v246_v63 = vld [vmem:[%s1989_s0 + $0x770] sm:$0xff] }
 0x183   :  { %725 = vxpose.xlu1.b32.start [1/16] (narrow) %v216_v2, 16  ;;  %v421_v2 = vpop.trf.xlu1 }
 0x184   :  { %920 = vst [vmem:[%s1990_s1 + $0x18] sm:$0xff] %v421_v2  ;;  %v299_v2 = vld [vmem:[%s1989_s0 + $0x918] sm:$0xff] }
 0x186   :  { %694 = vxpose.xlu0.b32.cont [2/16] (narrow) %v201_v1, 16  ;;  %v389_v1 = vpop.trf.xlu0 }
 0x187   :  { %726 = vxpose.xlu1.b32.cont [2/16] (narrow) %v217_v4, 16  ;;  %919 = vst [vmem:[%s1990_s1 + $0x10] sm:$0xff] %v389_v1  ;;  %v262_v4 = vld [vmem:[%s1989_s0 + $0x7f0] sm:$0xff] }
 0x18a   :  { %695 = vxpose.xlu0.b32.cont [3/16] (narrow) %v202_v3, 16  ;;  %v247_v3 = vld [vmem:[%s1989_s0 + $0x778] sm:$0xff] }
 0x18b   :  { %727 = vxpose.xlu1.b32.cont [3/16] (narrow) %v218_v6, 16  ;;  %v422_v6 = vpop.trf.xlu1 }
 0x18c   :  { %940 = vst [vmem:[%s1990_s1 + $0xb0] sm:$0xf] %v422_v6  ;;  %v302_v6 = vld [vmem:[%s1989_s0 + $0x930] sm:$0xff] }
 0x18e   :  { %696 = vxpose.xlu0.b32.cont [4/16] (narrow) %v203_v5, 16  ;;  %v390_v5 = vpop.trf.xlu0 }
 0x18f   :  { %728 = vxpose.xlu1.b32.cont [4/16] (narrow) %v219_v8, 16  ;;  %939 = vst [vmem:[%s1990_s1 + $0xa8] sm:$0xf] %v390_v5  ;;  %v263_v8 = vld [vmem:[%s1989_s0 + $0x7f8] sm:$0xff]  ;;  %v301_v5 = vld [vmem:[%s1989_s0 + $0x928] sm:$0xff] }
 0x192   :  { %697 = vxpose.xlu0.b32.cont [5/16] (narrow) %v204_v7, 16  ;;  %v264_v7 = vld [vmem:[%s1989_s0 + $0x800] sm:$0xff] }
 0x193   :  { %729 = vxpose.xlu1.b32.cont [5/16] (narrow) %v220_v10, 16  ;;  %v485_v10 = vpop.trf.xlu1 }
 0x194   :  { %922 = vst [vmem:[%s1990_s1 + $0x28] sm:$0xff] %v485_v10  ;;  %v306_v10 = vld [vmem:[%s1989_s0 + $0x950] sm:$0xff] }
 0x196   :  { %698 = vxpose.xlu0.b32.cont [6/16] (narrow) %v205_v9, 16  ;;  %v453_v9 = vpop.trf.xlu0 }
 0x197   :  { %730 = vxpose.xlu1.b32.cont [6/16] (narrow) %v221_v12, 16  ;;  %921 = vst [vmem:[%s1990_s1 + $0x20] sm:$0xff] %v453_v9  ;;  %v280_v12 = vld [vmem:[%s1989_s0 + $0x880] sm:$0xff]  ;;  %v305_v9 = vld [vmem:[%s1989_s0 + $0x948] sm:$0xff] }
 0x19a   :  { %699 = vxpose.xlu0.b32.cont [7/16] (narrow) %v206_v11, 16  ;;  %v265_v11 = vld [vmem:[%s1989_s0 + $0x808] sm:$0xff] }
 0x19b   :  { %731 = vxpose.xlu1.b32.cont [7/16] (narrow) %v222_v14, 16  ;;  %v486_v14 = vpop.trf.xlu1 }
 0x19c   :  { %942 = vst [vmem:[%s1990_s1 + $0xc0] sm:$0xf] %v486_v14 }
 0x19e   :  { %700 = vxpose.xlu0.b32.cont [8/16] (narrow) %v207_v13, 16  ;;  %v454_v13 = vpop.trf.xlu0 }
 0x19f   :  { %732 = vxpose.xlu1.b32.cont [8/16] (narrow) %v223_v16, 16  ;;  %941 = vst [vmem:[%s1990_s1 + $0xb8] sm:$0xf] %v454_v13  ;;  %v281_v16 = vld [vmem:[%s1989_s0 + $0x888] sm:$0xff] }
 0x1a2   :  { %701 = vxpose.xlu0.b32.cont [9/16] (narrow) %v208_v15, 16  ;;  %v266_v15 = vld [vmem:[%s1989_s0 + $0x810] sm:$0xff] }
 0x1a3   :  { %733 = vxpose.xlu1.b32.cont [9/16] (narrow) %v224_v18, 16  ;;  %v549_v18 = vpop.trf.xlu1 }
 0x1a4   :  { %924 = vst [vmem:[%s1990_s1 + $0x38] sm:$0xff] %v549_v18 }
 0x1a6   :  { %702 = vxpose.xlu0.b32.cont [10/16] (narrow) %v209_v17, 16  ;;  %v517_v17 = vpop.trf.xlu0 }
 0x1a7   :  { %734 = vxpose.xlu1.b32.cont [10/16] (narrow) %v225_v20, 16  ;;  %923 = vst [vmem:[%s1990_s1 + $0x30] sm:$0xff] %v517_v17  ;;  %v282_v20 = vld [vmem:[%s1989_s0 + $0x890] sm:$0xff] }
 0x1aa   :  { %703 = vxpose.xlu0.b32.cont [11/16] (narrow) %v210_v19, 16  ;;  %v267_v19 = vld [vmem:[%s1989_s0 + $0x818] sm:$0xff] }
 0x1ab   :  { %735 = vxpose.xlu1.b32.cont [11/16] (narrow) %v226_v22, 16  ;;  %v550_v22 = vpop.trf.xlu1 }
 0x1ac   :  { %944 = vst [vmem:[%s1990_s1 + $0xd0] sm:$0xf] %v550_v22 }
 0x1ae   :  { %704 = vxpose.xlu0.b32.cont [12/16] (narrow) %v211_v21, 16  ;;  %v518_v21 = vpop.trf.xlu0 }
 0x1af   :  { %736 = vxpose.xlu1.b32.cont [12/16] (narrow) %v227_v24, 16  ;;  %943 = vst [vmem:[%s1990_s1 + $0xc8] sm:$0xf] %v518_v21  ;;  %v283_v24 = vld [vmem:[%s1989_s0 + $0x898] sm:$0xff] }
 0x1b2   :  { %705 = vxpose.xlu0.b32.cont [13/16] (narrow) %v212_v23, 16  ;;  %v268_v23 = vld [vmem:[%s1989_s0 + $0x820] sm:$0xff] }
 0x1b3   :  { %737 = vxpose.xlu1.b32.cont [13/16] (narrow) %v228_v26, 16  ;;  %v613_v26 = vpop.trf.xlu1 }
 0x1b4   :  { %926 = vst [vmem:[%s1990_s1 + $0x48] sm:$0xff] %v613_v26 }
 0x1b6   :  { %706 = vxpose.xlu0.b32.cont [14/16] (narrow) %v213_v25, 16  ;;  %v581_v25 = vpop.trf.xlu0 }
 0x1b7   :  { %738 = vxpose.xlu1.b32.cont [14/16] (narrow) %v229_v28, 16  ;;  %925 = vst [vmem:[%s1990_s1 + $0x40] sm:$0xff] %v581_v25  ;;  %v284_v28 = vld [vmem:[%s1989_s0 + $0x8a0] sm:$0xff] }
 0x1ba   :  { %707 = vxpose.xlu0.b32.cont [15/16] (narrow) %v214_v27, 16  ;;  %v269_v27 = vld [vmem:[%s1989_s0 + $0x828] sm:$0xff] }
 0x1bb   :  { %739 = vxpose.xlu1.b32.cont [15/16] (narrow) %v230_v30, 16  ;;  %v614_v30 = vpop.trf.xlu1 }
 0x1bc   :  { %946 = vst [vmem:[%s1990_s1 + $0xe0] sm:$0xf] %v614_v30 }
 0x1be   :  { %708 = vxpose.xlu0.b32.end [16/16] (narrow) %v215_v29, 16  ;;  %v582_v29 = vpop.trf.xlu0 }
 0x1bf   :  { %740 = vxpose.xlu1.b32.end [16/16] (narrow) %v231_v32, 16  ;;  %945 = vst [vmem:[%s1990_s1 + $0xd8] sm:$0xf] %v582_v29  ;;  %v285_v32 = vld [vmem:[%s1989_s0 + $0x8a8] sm:$0xff] }
 0x1c2   :  { %757 = vxpose.xlu0.b32.start [1/16] (narrow) %v232_v31, 16  ;;  %v270_v31 = vld [vmem:[%s1989_s0 + $0x830] sm:$0xff] }
 0x1c3   :  { %789 = vxpose.xlu1.b32.start [1/16] (narrow) %v248_v34, 16  ;;  %v677_v34 = vpop.trf.xlu1 }
 0x1c4   :  { %928 = vst [vmem:[%s1990_s1 + $0x58] sm:$0xff] %v677_v34 }
 0x1c6   :  { %758 = vxpose.xlu0.b32.cont [2/16] (narrow) %v233_v33, 16  ;;  %v645_v33 = vpop.trf.xlu0 }
 0x1c7   :  { %790 = vxpose.xlu1.b32.cont [2/16] (narrow) %v249_v36, 16  ;;  %927 = vst [vmem:[%s1990_s1 + $0x50] sm:$0xff] %v645_v33  ;;  %v286_v36 = vld [vmem:[%s1989_s0 + $0x8b0] sm:$0xff] }
 0x1ca   :  { %759 = vxpose.xlu0.b32.cont [3/16] (narrow) %v234_v35, 16  ;;  %v271_v35 = vld [vmem:[%s1989_s0 + $0x838] sm:$0xff] }
 0x1cb   :  { %791 = vxpose.xlu1.b32.cont [3/16] (narrow) %v250_v38, 16  ;;  %v678_v38 = vpop.trf.xlu1 }
 0x1cc   :  { %948 = vst [vmem:[%s1990_s1 + $0xf0] sm:$0xf] %v678_v38 }
 0x1ce   :  { %760 = vxpose.xlu0.b32.cont [4/16] (narrow) %v235_v37, 16  ;;  %v646_v37 = vpop.trf.xlu0 }
 0x1cf   :  { %792 = vxpose.xlu1.b32.cont [4/16] (narrow) %v251_v40, 16  ;;  %947 = vst [vmem:[%s1990_s1 + $0xe8] sm:$0xf] %v646_v37  ;;  %v287_v40 = vld [vmem:[%s1989_s0 + $0x8b8] sm:$0xff] }
 0x1d2   :  { %761 = vxpose.xlu0.b32.cont [5/16] (narrow) %v236_v39, 16  ;;  %v272_v39 = vld [vmem:[%s1989_s0 + $0x840] sm:$0xff] }
 0x1d3   :  { %793 = vxpose.xlu1.b32.cont [5/16] (narrow) %v252_v42, 16 }
 0x1d6   :  { %762 = vxpose.xlu0.b32.cont [6/16] (narrow) %v237_v41, 16 }
 0x1d7   :  { %794 = vxpose.xlu1.b32.cont [6/16] (narrow) %v253_v44, 16  ;;  %v288_v44 = vld [vmem:[%s1989_s0 + $0x8c0] sm:$0xff] }
 0x1da   :  { %763 = vxpose.xlu0.b32.cont [7/16] (narrow) %v238_v43, 16  ;;  %v273_v43 = vld [vmem:[%s1989_s0 + $0x848] sm:$0xff] }
 0x1db   :  { %795 = vxpose.xlu1.b32.cont [7/16] (narrow) %v254_v46, 16 }
 0x1de   :  { %764 = vxpose.xlu0.b32.cont [8/16] (narrow) %v239_v45, 16 }
 0x1df   :  { %796 = vxpose.xlu1.b32.cont [8/16] (narrow) %v255_v48, 16  ;;  %v289_v48 = vld [vmem:[%s1989_s0 + $0x8c8] sm:$0xff] }
 0x1e2   :  { %765 = vxpose.xlu0.b32.cont [9/16] (narrow) %v240_v47, 16  ;;  %v274_v47 = vld [vmem:[%s1989_s0 + $0x850] sm:$0xff] }
 0x1e3   :  { %797 = vxpose.xlu1.b32.cont [9/16] (narrow) %v256_v50, 16  ;;  %v290_v50 = vld [vmem:[%s1989_s0 + $0x8d0] sm:$0xff] }
 0x1e6   :  { %766 = vxpose.xlu0.b32.cont [10/16] (narrow) %v241_v49, 16  ;;  %v275_v49 = vld [vmem:[%s1989_s0 + $0x858] sm:$0xff] }
 0x1e7   :  { %798 = vxpose.xlu1.b32.cont [10/16] (narrow) %v257_v52, 16  ;;  %v291_v52 = vld [vmem:[%s1989_s0 + $0x8d8] sm:$0xff] }
 0x1ea   :  { %767 = vxpose.xlu0.b32.cont [11/16] (narrow) %v242_v51, 16  ;;  %v276_v51 = vld [vmem:[%s1989_s0 + $0x860] sm:$0xff] }
 0x1eb   :  { %799 = vxpose.xlu1.b32.cont [11/16] (narrow) %v258_v54, 16  ;;  %v292_v54 = vld [vmem:[%s1989_s0 + $0x8e0] sm:$0xff] }
 0x1ee   :  { %768 = vxpose.xlu0.b32.cont [12/16] (narrow) %v243_v53, 16  ;;  %v277_v53 = vld [vmem:[%s1989_s0 + $0x868] sm:$0xff] }
 0x1ef   :  { %800 = vxpose.xlu1.b32.cont [12/16] (narrow) %v259_v56, 16  ;;  %v293_v56 = vld [vmem:[%s1989_s0 + $0x8e8] sm:$0xff] }
 0x1f2   :  { %769 = vxpose.xlu0.b32.cont [13/16] (narrow) %v244_v55, 16  ;;  %v278_v55 = vld [vmem:[%s1989_s0 + $0x870] sm:$0xff] }
 0x1f3   :  { %801 = vxpose.xlu1.b32.cont [13/16] (narrow) %v260_v60, 16  ;;  %v295_v60 = vld [vmem:[%s1989_s0 + $0x8f8] sm:$0xff] }
 0x1f6   :  { %770 = vxpose.xlu0.b32.cont [14/16] (narrow) %v245_v59, 16  ;;  %v296_v59 = vld [vmem:[%s1989_s0 + $0x900] sm:$0xff] }
 0x1f7   :  { %802 = vxpose.xlu1.b32.cont [14/16] (narrow) %v261_v0, 16  ;;  %v298_v0 = vld [vmem:[%s1989_s0 + $0x910] sm:$0xff] }
 0x1fa   :  { %771 = vxpose.xlu0.b32.cont [15/16] (narrow) %v246_v63, 16 }
 0x1fb   :  { %803 = vxpose.xlu1.b32.cont [15/16] (narrow) %v262_v4, 16  ;;  %v300_v4 = vld [vmem:[%s1989_s0 + $0x920] sm:$0xff] }
 0x1fe   :  { %772 = vxpose.xlu0.b32.end [16/16] (narrow) %v247_v3, 16 }
 0x1ff   :  { %804 = vxpose.xlu1.b32.end [16/16] (narrow) %v263_v8, 16  ;;  %v304_v8 = vld [vmem:[%s1989_s0 + $0x940] sm:$0xff] }
 0x202   :  { %821 = vxpose.xlu0.b32.start [1/16] (narrow) %v264_v7, 16  ;;  %v709_v41 = vpop.trf.xlu0  ;;  %v303_v7 = vld [vmem:[%s1989_s0 + $0x938] sm:$0xff] }
 0x203   :  { %853 = vxpose.xlu1.b32.start [1/16] (narrow) %v280_v12, 16  ;;  %v741_v42 = vpop.trf.xlu1  ;;  %929 = vst [vmem:[%s1990_s1 + $0x60] sm:$0xff] %v709_v41  ;;  %v308_v12 = vld [vmem:[%s1989_s0 + $0x960] sm:$0x1] }
 0x204   :  { %930 = vst [vmem:[%s1990_s1 + $0x68] sm:$0xff] %v741_v42 }
 0x206   :  { %822 = vxpose.xlu0.b32.cont [2/16] (narrow) %v265_v11, 16  ;;  %v710_v45 = vpop.trf.xlu0  ;;  %v307_v11 = vld [vmem:[%s1989_s0 + $0x958] sm:$0xff] }
 0x207   :  { %854 = vxpose.xlu1.b32.cont [2/16] (narrow) %v281_v16, 16  ;;  %v742_v46 = vpop.trf.xlu1  ;;  %949 = vst [vmem:[%s1990_s1 + $0xf8] sm:$0xf] %v710_v45 }
 0x208   :  { %950 = vst [vmem:[%s1990_s1 + $0x100] sm:$0xf] %v742_v46 }
 0x20a   :  { %823 = vxpose.xlu0.b32.cont [3/16] (narrow) %v266_v15, 16 }
 0x20b   :  { %855 = vxpose.xlu1.b32.cont [3/16] (narrow) %v282_v20, 16 }
 0x20e   :  { %824 = vxpose.xlu0.b32.cont [4/16] (narrow) %v267_v19, 16 }
 0x20f   :  { %856 = vxpose.xlu1.b32.cont [4/16] (narrow) %v283_v24, 16 }
 0x212   :  { %825 = vxpose.xlu0.b32.cont [5/16] (narrow) %v268_v23, 16 }
 0x213   :  { %857 = vxpose.xlu1.b32.cont [5/16] (narrow) %v284_v28, 16 }
 0x216   :  { %826 = vxpose.xlu0.b32.cont [6/16] (narrow) %v269_v27, 16 }
 0x217   :  { %858 = vxpose.xlu1.b32.cont [6/16] (narrow) %v285_v32, 16 }
 0x21a   :  { %827 = vxpose.xlu0.b32.cont [7/16] (narrow) %v270_v31, 16 }
 0x21b   :  { %859 = vxpose.xlu1.b32.cont [7/16] (narrow) %v286_v36, 16 }
 0x21e   :  { %828 = vxpose.xlu0.b32.cont [8/16] (narrow) %v271_v35, 16 }
 0x21f   :  { %860 = vxpose.xlu1.b32.cont [8/16] (narrow) %v287_v40, 16 }
 0x222   :  { %829 = vxpose.xlu0.b32.cont [9/16] (narrow) %v272_v39, 16 }
 0x223   :  { %861 = vxpose.xlu1.b32.cont [9/16] (narrow) %v288_v44, 16 }
 0x226   :  { %830 = vxpose.xlu0.b32.cont [10/16] (narrow) %v273_v43, 16 }
 0x227   :  { %862 = vxpose.xlu1.b32.cont [10/16] (narrow) %v289_v48, 16 }
 0x22a   :  { %831 = vxpose.xlu0.b32.cont [11/16] (narrow) %v274_v47, 16 }
 0x22b   :  { %863 = vxpose.xlu1.b32.cont [11/16] (narrow) %v290_v50, 16 }
 0x22e   :  { %832 = vxpose.xlu0.b32.cont [12/16] (narrow) %v275_v49, 16 }
 0x22f   :  { %864 = vxpose.xlu1.b32.cont [12/16] (narrow) %v291_v52, 16 }
 0x232   :  { %833 = vxpose.xlu0.b32.cont [13/16] (narrow) %v276_v51, 16 }
 0x233   :  { %865 = vxpose.xlu1.b32.cont [13/16] (narrow) %v292_v54, 16 }
 0x236   :  { %834 = vxpose.xlu0.b32.cont [14/16] (narrow) %v277_v53, 16 }
 0x237   :  { %866 = vxpose.xlu1.b32.cont [14/16] (narrow) %v293_v56, 16 }
 0x23a   :  { %835 = vxpose.xlu0.b32.cont [15/16] (narrow) %v278_v55, 16 }
 0x23b   :  { %867 = vxpose.xlu1.b32.cont [15/16] (narrow) %v294_v58, 16 }
 0x23e   :  { %836 = vxpose.xlu0.b32.end [16/16] (narrow) %v279_v57, 16 }
 0x23f   :  { %868 = vxpose.xlu1.b32.end [16/16] (narrow) %v295_v60, 16 }
 0x242   :  { %885 = vxpose.xlu0.b32.start [1/13] (short) (narrow) %v296_v59, 16  ;;  %v773_v61 = vpop.trf.xlu0 }
 0x243   :  { %931 = vst [vmem:[%s1990_s1 + $0x70] sm:$0xff] %v773_v61  ;;  %v805_v1 = vpop.trf.xlu1 }
 0x244   :  { %932 = vst [vmem:[%s1990_s1 + $0x78] sm:$0xff] %v805_v1 }
 0x246   :  { %886 = vxpose.xlu0.b32.cont [2/13] (short) (narrow) %v297_v62, 16  ;;  %v774_v63 = vpop.trf.xlu0 }
 0x247   :  { %951 = vst [vmem:[%s1990_s1 + $0x108] sm:$0xf] %v774_v63  ;;  %v806_v3 = vpop.trf.xlu1 }
 0x248   :  { %952 = vst [vmem:[%s1990_s1 + $0x110] sm:$0xf] %v806_v3 }
 0x24a   :  { %887 = vxpose.xlu0.b32.cont [3/13] (short) (narrow) %v298_v0, 16 }
 0x24e   :  { %888 = vxpose.xlu0.b32.cont [4/13] (short) (narrow) %v299_v2, 16 }
 0x252   :  { %889 = vxpose.xlu0.b32.cont [5/13] (short) (narrow) %v300_v4, 16 }
 0x256   :  { %890 = vxpose.xlu0.b32.cont [6/13] (short) (narrow) %v301_v5, 16 }
 0x25a   :  { %891 = vxpose.xlu0.b32.cont [7/13] (short) (narrow) %v302_v6, 16 }
 0x25e   :  { %892 = vxpose.xlu0.b32.cont [8/13] (short) (narrow) %v303_v7, 16 }
 0x262   :  { %893 = vxpose.xlu0.b32.cont [9/13] (short) (narrow) %v304_v8, 16 }
 0x266   :  { %894 = vxpose.xlu0.b32.cont [10/13] (short) (narrow) %v305_v9, 16 }
 0x26a   :  { %895 = vxpose.xlu0.b32.cont [11/13] (short) (narrow) %v306_v10, 16 }
 0x26e   :  { %896 = vxpose.xlu0.b32.cont [12/13] (short) (narrow) %v307_v11, 16 }
 0x272   :  { %897 = vxpose.xlu0.b32.end [13/13] (short) (narrow) %v308_v12, 16 }
 0x282   :  { %v837_v13 = vpop.trf.xlu0 }
 0x283   :  { %933 = vst [vmem:[%s1990_s1 + $0x80] sm:$0xff] %v837_v13  ;;  %v869_v15 = vpop.trf.xlu1 }
 0x284   :  { %934 = vst [vmem:[%s1990_s1 + $0x88] sm:$0xff] %v869_v15 }
 0x286   :  { %v838_v14 = vpop.trf.xlu0 }
 0x287   :  { %953 = vst [vmem:[%s1990_s1 + $0x118] sm:$0xf] %v838_v14  ;;  %v870_v16 = vpop.trf.xlu1 }
 0x288   :  { %954 = vst [vmem:[%s1990_s1 + $0x120] sm:$0xf] %v870_v16 }
 0x2c2   :  { %v901_v17 = vpop.trf.xlu0 }
 0x2c3   :  { %936 = vst.msk [vmem:[%s1990_s1 + $0x90] sm:$0xff] %vm935_vm0, %v901_v17 }
 0x2c6   :  { %v902_v18 = vpop.trf.xlu0 }
 0x2c7   :  { %956 = vst.msk [vmem:[%s1990_s1 + $0x128] sm:$0xf] %vm955_vm1, %v902_v18 }

</bundles_post_ra>
